<compile_context>
chip_gen: v7x
topology: tpu7x:2x2x1
jax: 0.10.0
libtpu: 0.0.40
codegen_flags: <defaults>
</compile_context>

<pallas_src>
import functools

import jax
import jax.numpy as jnp
from jax.experimental import pallas as pl
from jax.experimental.pallas import tpu as pltpu

KH = KW = 3   # conv kernel; pad=1, stride=1 -> same spatial size
PAD = 1


def _conv_frozenbn_relu_kernel(x_ref, w_ref, b_ref, o_ref, *,
                               n_batch, h_out, h_pad):
    """Fused Conv2d(3x3, same) + frozen-BN + ReLU in one grid step.

    x_ref: (N*Hp, Wp*Cin) f32  SAME-padded NHWC input; rows=(n,hp), lanes=(wp,cin)
    w_ref: (KH, Wp*Cin, W*Cout) f32  per-kh banded conv weights (BN scale folded)
    b_ref: (1, W*Cout) f32     frozen-BN bias, tiled per output column w
    o_ref: (N*H, W*Cout) f32   packed lane-dense output
    """
    wcout = o_ref.shape[1]
    for n in range(n_batch):                      # tiny static loop (N*KH matmuls)
        acc = jnp.zeros((h_out, wcout), jnp.float32)
        for kh in range(w_ref.shape[0]):
            r0 = n * h_pad + kh
            xs = x_ref[r0:r0 + h_out, :]          # (H, Wp*Cin) static slice
            acc = acc + jnp.dot(xs, w_ref[kh],
                                preferred_element_type=jnp.float32)
        # frozen-BN bias + ReLU epilogue (f32, VPU)
        o_ref[n * h_out:(n + 1) * h_out, :] = jnp.maximum(acc + b_ref[...], 0.0)


def prepare_frozen_bn_conv_params(conv_w_oihw, bn_gamma, bn_beta,
                                  bn_running_mean, bn_running_var,
                                  spatial_w, eps=1e-5):
    """One-time (model-load) repack.

    * Folds the frozen-BN scale into the conv weights (in f32, no bf16 cast).
    * Builds per-kh banded weight matrices of shape (KH, Wp*Cin, W*Cout) so the
      in-kernel conv is KH plain matmuls that directly produce the packed
      lane-dense (N*H, W*Cout) output.
    * Packs the frozen-BN bias as a (1, W*Cout) row.
    """
    cout, cin, kh_n, kw_n = conv_w_oihw.shape
    w_out = spatial_w
    wp = w_out + 2 * PAD

    scale = bn_gamma * jax.lax.rsqrt(bn_running_var + eps)      # (Cout,)
    bias = bn_beta - bn_running_mean * scale                    # (Cout,)

    w_fold = conv_w_oihw * scale[:, None, None, None]           # (Cout,Cin,KH,KW)
    w_k = jnp.transpose(w_fold, (2, 3, 1, 0))                   # (KH,KW,Cin,Cout)

    banded = jnp.zeros((kh_n, wp * cin, w_out * cout), jnp.float32)
    for kh in range(kh_n):
        for kw in range(kw_n):
            for w in range(w_out):
                banded = banded.at[
                    kh,
                    (w + kw) * cin:(w + kw + 1) * cin,
                    w * cout:(w + 1) * cout].set(w_k[kh, kw])

    bias_packed = jnp.tile(bias, (w_out,)).reshape(1, w_out * cout)
    return banded, bias_packed


@jax.jit
def freezed_bn_model_forward(x_nchw, w_banded, bias_packed):
    """Forward of FreezedBnModel(Conv2d -> frozen BatchNorm2d -> ReLU).

    x_nchw: (N, Cin, H, W) float32 (PyTorch NCHW convention)
    w_banded / bias_packed: outputs of prepare_frozen_bn_conv_params
    returns: (N, Cout, H, W) float32, NCHW
    """
    n, cin, h, w = x_nchw.shape
    kh_n, wpcin, wcout = w_banded.shape
    cout = wcout // w
    hp, wp = h + 2 * PAD, w + 2 * PAD

    # ---- thin glue (plain JAX, ~10 KiB): NCHW -> padded NHWC -> 2-D view ----
    # TODO(synk): the NCHW->NHWC transpose could also be folded into the kernel
    # with a strided gather, but at ~10 KiB it is noise next to launch cost.
    x2d = jnp.pad(jnp.transpose(x_nchw, (0, 2, 3, 1)),
                  ((0, 0), (PAD, PAD), (PAD, PAD), (0, 0)))
    x2d = x2d.reshape(n * hp, wp * cin)

    flops = 2 * n * h * w * (KH * KW * cin) * cout
    bytes_accessed = 4 * (x2d.size + w_banded.size + bias_packed.size
                          + n * h * wcout)

    kernel = functools.partial(_conv_frozenbn_relu_kernel,
                               n_batch=n, h_out=h, h_pad=hp)

    out2d = pl.pallas_call(
        kernel,
        out_shape=jax.ShapeDtypeStruct((n * h, wcout), jnp.float32),
        grid=(1,),   # everything fits in VMEM -> pay pipeline overhead once
        in_specs=[
            pl.BlockSpec((n * hp, wp * cin), lambda i: (0, 0)),
            pl.BlockSpec((kh_n, wpcin, wcout), lambda i: (0, 0, 0)),
            pl.BlockSpec((1, wcout), lambda i: (0, 0)),
        ],
        out_specs=pl.BlockSpec((n * h, wcout), lambda i: (0, 0)),
        compiler_params=pltpu.CompilerParams(
            dimension_semantics=("arbitrary",)),
        cost_estimate=pl.CostEstimate(flops=flops, transcendentals=0,
                                      bytes_accessed=bytes_accessed),
    )(x2d, w_banded, bias_packed)

    # Unpack lane-dense (N*H, W*Cout) -> NCHW.
    return jnp.transpose(out2d.reshape(n, h, w, cout), (0, 3, 1, 2))


def _reference_forward(x_nchw, conv_w_oihw, gamma, beta, mean, var):
    """Pure-JAX f32 reference (Conv2d -> frozen BN -> ReLU)."""
    eps = 1e-5
    y = jax.lax.conv_general_dilated(
        x_nchw, conv_w_oihw, window_strides=(1, 1), padding="SAME",
        dimension_numbers=("NCHW", "OIHW", "NCHW"),
        precision=jax.lax.Precision.HIGHEST)
    scale = gamma * jax.lax.rsqrt(var + eps)
    bias = beta - mean * scale
    y = y * scale[None, :, None, None] + bias[None, :, None, None]
    return jnp.maximum(y, 0.0)


if __name__ == "__main__":
    key = jax.random.PRNGKey(0)
    k_x, k_w, k_g, k_b, k_m, k_v = jax.random.split(key, 6)

    N, Cin, H, W = 2, 4, 16, 16
    Cout = 8

    x = jax.random.normal(k_x, (N, Cin, H, W), dtype=jnp.float32)
    conv_w = jax.random.normal(k_w, (Cout, Cin, KH, KW), dtype=jnp.float32) * 0.1
    bn_gamma = 1.0 + 0.1 * jax.random.normal(k_g, (Cout,), dtype=jnp.float32)
    bn_beta = 0.1 * jax.random.normal(k_b, (Cout,), dtype=jnp.float32)
    bn_mean = 0.1 * jax.random.normal(k_m, (Cout,), dtype=jnp.float32)
    bn_var = jax.random.uniform(k_v, (Cout,), dtype=jnp.float32,
                                minval=0.5, maxval=1.5)

    # One-time parameter repack (frozen-BN fold + banded weight matrices).
    w_banded, bias_packed = prepare_frozen_bn_conv_params(
        conv_w, bn_gamma, bn_beta, bn_mean, bn_var, spatial_w=W)

    out = freezed_bn_model_forward(x, w_banded, bias_packed)
    out = jax.block_until_ready(out)

    ref = _reference_forward(x, conv_w, bn_gamma, bn_beta, bn_mean, bn_var)
    ref = jax.block_until_ready(ref)

    assert out.shape == (N, Cout, H, W)
    assert jnp.allclose(out, ref, atol=2e-2, rtol=2e-2), "mismatch vs reference"

    print("KERNEL_OK")
</pallas_src>

<mosaic_0001>
module attributes {stable_mosaic.version = 11 : i64} {
  func.func @_conv_frozenbn_relu_kernel(%arg0: i32, %arg1: memref<36x72xf32, #tpu.memory_space<vmem>>, %arg2: memref<3x72x128xf32, #tpu.memory_space<vmem>>, %arg3: memref<1x128xf32, #tpu.memory_space<vmem>>, %arg4: memref<32x128xf32, #tpu.memory_space<vmem>>) attributes {dimension_semantics = [#tpu.dimension_semantics<arbitrary>], iteration_bounds = array<i64: 1>, scalar_prefetch = 0 : i64, scratch_operands = 0 : i64, tpu.core_type = #tpu.core_type<tc>, window_params = [{pipeline_mode = #tpu.pipeline_mode<synchronous>, transform_indices = @transform_0, window_bounds = array<i64: 36, 72>}, {pipeline_mode = #tpu.pipeline_mode<synchronous>, transform_indices = @transform_1, window_bounds = array<i64: 3, 72, 128>}, {pipeline_mode = #tpu.pipeline_mode<synchronous>, transform_indices = @transform_2, window_bounds = array<i64: 1, 128>}, {pipeline_mode = #tpu.pipeline_mode<synchronous>, transform_indices = @transform_3, window_bounds = array<i64: 32, 128>}]} {
    %cst = arith.constant 0.000000e+00 : f32
    %0 = vector.broadcast %cst : f32 to vector<16x128xf32>
    %c0 = arith.constant 0 : index
    %c0_0 = arith.constant 0 : index
    %1 = vector.load %arg1[%c0, %c0_0] : memref<36x72xf32, #tpu.memory_space<vmem>>, vector<16x72xf32>
    %c0_1 = arith.constant 0 : index
    %c0_2 = arith.constant 0 : index
    %c0_3 = arith.constant 0 : index
    %2 = vector.load %arg2[%c0_1, %c0_2, %c0_3] : memref<3x72x128xf32, #tpu.memory_space<vmem>>, vector<1x72x128xf32>
    %3 = vector.shape_cast %2 : vector<1x72x128xf32> to vector<72x128xf32>
    %cst_4 = arith.constant dense<0.000000e+00> : vector<16x128xf32>
    %4 = tpu.matmul %1, %3, %cst_4 {dimension_numbers = #tpu.dot_dimension_numbers<[1], [0], [0], [1], [0, 0, 1, 1], [], []>} : vector<16x72xf32>, vector<72x128xf32>, vector<16x128xf32> -> vector<16x128xf32>
    %5 = arith.addf %0, %4 : vector<16x128xf32>
    %c1 = arith.constant 1 : index
    %c0_5 = arith.constant 0 : index
    %6 = vector.load %arg1[%c1, %c0_5] : memref<36x72xf32, #tpu.memory_space<vmem>>, vector<16x72xf32>
    %c1_6 = arith.constant 1 : index
    %c0_7 = arith.constant 0 : index
    %c0_8 = arith.constant 0 : index
    %7 = vector.load %arg2[%c1_6, %c0_7, %c0_8] : memref<3x72x128xf32, #tpu.memory_space<vmem>>, vector<1x72x128xf32>
    %8 = vector.shape_cast %7 : vector<1x72x128xf32> to vector<72x128xf32>
    %cst_9 = arith.constant dense<0.000000e+00> : vector<16x128xf32>
    %9 = tpu.matmul %6, %8, %cst_9 {dimension_numbers = #tpu.dot_dimension_numbers<[1], [0], [0], [1], [0, 0, 1, 1], [], []>} : vector<16x72xf32>, vector<72x128xf32>, vector<16x128xf32> -> vector<16x128xf32>
    %10 = arith.addf %5, %9 : vector<16x128xf32>
    %c2 = arith.constant 2 : index
    %c0_10 = arith.constant 0 : index
    %11 = vector.load %arg1[%c2, %c0_10] : memref<36x72xf32, #tpu.memory_space<vmem>>, vector<16x72xf32>
    %c2_11 = arith.constant 2 : index
    %c0_12 = arith.constant 0 : index
    %c0_13 = arith.constant 0 : index
    %12 = vector.load %arg2[%c2_11, %c0_12, %c0_13] : memref<3x72x128xf32, #tpu.memory_space<vmem>>, vector<1x72x128xf32>
    %13 = vector.shape_cast %12 : vector<1x72x128xf32> to vector<72x128xf32>
    %cst_14 = arith.constant dense<0.000000e+00> : vector<16x128xf32>
    %14 = tpu.matmul %11, %13, %cst_14 {dimension_numbers = #tpu.dot_dimension_numbers<[1], [0], [0], [1], [0, 0, 1, 1], [], []>} : vector<16x72xf32>, vector<72x128xf32>, vector<16x128xf32> -> vector<16x128xf32>
    %15 = arith.addf %10, %14 : vector<16x128xf32>
    %c0_15 = arith.constant 0 : index
    %c0_16 = arith.constant 0 : index
    %16 = vector.load %arg3[%c0_15, %c0_16] : memref<1x128xf32, #tpu.memory_space<vmem>>, vector<1x128xf32>
    %17 = vector.broadcast %16 : vector<1x128xf32> to vector<16x128xf32>
    %18 = arith.addf %15, %17 : vector<16x128xf32>
    %cst_17 = arith.constant 0.000000e+00 : f32
    %19 = vector.broadcast %cst_17 : f32 to vector<16x128xf32>
    %20 = arith.maximumf %18, %19 : vector<16x128xf32>
    %c0_18 = arith.constant 0 : index
    %c0_19 = arith.constant 0 : index
    %21 = vector.load %arg4[%c0_18, %c0_19] : memref<32x128xf32, #tpu.memory_space<vmem>>, vector<16x128xf32>
    tpu.vector_store %arg4[%c0_18, %c0_19], %20 {strides = array<i32>} : memref<32x128xf32, #tpu.memory_space<vmem>>, vector<16x128xf32>,
    %cst_20 = arith.constant 0.000000e+00 : f32
    %22 = vector.broadcast %cst_20 : f32 to vector<16x128xf32>
    %c18 = arith.constant 18 : index
    %c0_21 = arith.constant 0 : index
    %23 = vector.load %arg1[%c18, %c0_21] : memref<36x72xf32, #tpu.memory_space<vmem>>, vector<16x72xf32>
    %c0_22 = arith.constant 0 : index
    %c0_23 = arith.constant 0 : index
    %c0_24 = arith.constant 0 : index
    %24 = vector.load %arg2[%c0_22, %c0_23, %c0_24] : memref<3x72x128xf32, #tpu.memory_space<vmem>>, vector<1x72x128xf32>
    %25 = vector.shape_cast %24 : vector<1x72x128xf32> to vector<72x128xf32>
    %cst_25 = arith.constant dense<0.000000e+00> : vector<16x128xf32>
    %26 = tpu.matmul %23, %25, %cst_25 {dimension_numbers = #tpu.dot_dimension_numbers<[1], [0], [0], [1], [0, 0, 1, 1], [], []>} : vector<16x72xf32>, vector<72x128xf32>, vector<16x128xf32> -> vector<16x128xf32>
    %27 = arith.addf %22, %26 : vector<16x128xf32>
    %c19 = arith.constant 19 : index
    %c0_26 = arith.constant 0 : index
    %28 = vector.load %arg1[%c19, %c0_26] : memref<36x72xf32, #tpu.memory_space<vmem>>, vector<16x72xf32>
    %c1_27 = arith.constant 1 : index
    %c0_28 = arith.constant 0 : index
    %c0_29 = arith.constant 0 : index
    %29 = vector.load %arg2[%c1_27, %c0_28, %c0_29] : memref<3x72x128xf32, #tpu.memory_space<vmem>>, vector<1x72x128xf32>
    %30 = vector.shape_cast %29 : vector<1x72x128xf32> to vector<72x128xf32>
    %cst_30 = arith.constant dense<0.000000e+00> : vector<16x128xf32>
    %31 = tpu.matmul %28, %30, %cst_30 {dimension_numbers = #tpu.dot_dimension_numbers<[1], [0], [0], [1], [0, 0, 1, 1], [], []>} : vector<16x72xf32>, vector<72x128xf32>, vector<16x128xf32> -> vector<16x128xf32>
    %32 = arith.addf %27, %31 : vector<16x128xf32>
    %c20 = arith.constant 20 : index
    %c0_31 = arith.constant 0 : index
    %33 = vector.load %arg1[%c20, %c0_31] : memref<36x72xf32, #tpu.memory_space<vmem>>, vector<16x72xf32>
    %c2_32 = arith.constant 2 : index
    %c0_33 = arith.constant 0 : index
    %c0_34 = arith.constant 0 : index
    %34 = vector.load %arg2[%c2_32, %c0_33, %c0_34] : memref<3x72x128xf32, #tpu.memory_space<vmem>>, vector<1x72x128xf32>
    %35 = vector.shape_cast %34 : vector<1x72x128xf32> to vector<72x128xf32>
    %cst_35 = arith.constant dense<0.000000e+00> : vector<16x128xf32>
    %36 = tpu.matmul %33, %35, %cst_35 {dimension_numbers = #tpu.dot_dimension_numbers<[1], [0], [0], [1], [0, 0, 1, 1], [], []>} : vector<16x72xf32>, vector<72x128xf32>, vector<16x128xf32> -> vector<16x128xf32>
    %37 = arith.addf %32, %36 : vector<16x128xf32>
    %c0_36 = arith.constant 0 : index
    %c0_37 = arith.constant 0 : index
    %38 = vector.load %arg3[%c0_36, %c0_37] : memref<1x128xf32, #tpu.memory_space<vmem>>, vector<1x128xf32>
    %39 = vector.broadcast %38 : vector<1x128xf32> to vector<16x128xf32>
    %40 = arith.addf %37, %39 : vector<16x128xf32>
    %cst_38 = arith.constant 0.000000e+00 : f32
    %41 = vector.broadcast %cst_38 : f32 to vector<16x128xf32>
    %42 = arith.maximumf %40, %41 : vector<16x128xf32>
    %c16 = arith.constant 16 : index
    %c0_39 = arith.constant 0 : index
    %43 = vector.load %arg4[%c16, %c0_39] : memref<32x128xf32, #tpu.memory_space<vmem>>, vector<16x128xf32>
    tpu.vector_store %arg4[%c16, %c0_39], %42 {strides = array<i32>} : memref<32x128xf32, #tpu.memory_space<vmem>>, vector<16x128xf32>,
    return
  }
  func.func @transform_0(%arg0: i32) -> (i32, i32) {
    %c0_i32 = arith.constant 0 : i32
    %c0_i32_0 = arith.constant 0 : i32
    %c0_i32_1 = arith.constant 0 : i32
    return %c0_i32, %c0_i32_0 : i32, i32
  }
  func.func @transform_1(%arg0: i32) -> (i32, i32, i32) {
    %c0_i32 = arith.constant 0 : i32
    %c0_i32_0 = arith.constant 0 : i32
    %c0_i32_1 = arith.constant 0 : i32
    %c0_i32_2 = arith.constant 0 : i32
    return %c0_i32, %c0_i32_0, %c0_i32_1 : i32, i32, i32
  }
  func.func @transform_2(%arg0: i32) -> (i32, i32) {
    %c0_i32 = arith.constant 0 : i32
    %c0_i32_0 = arith.constant 0 : i32
    %c0_i32_1 = arith.constant 0 : i32
    return %c0_i32, %c0_i32_0 : i32, i32
  }
  func.func @transform_3(%arg0: i32) -> (i32, i32) {
    %c0_i32 = arith.constant 0 : i32
    %c0_i32_0 = arith.constant 0 : i32
    %c0_i32_1 = arith.constant 0 : i32
    return %c0_i32, %c0_i32_0 : i32, i32
  }
}

</mosaic_0001>

<bundles_post_ra>
// kernel: freezed_bn_model_forward.1
= control target key start
LH: loop header
LB: loop body
LE: loop exit
PB: predicated region body
PF: predicated region fallthrough
CT: control target
= control target key end

     0   :  { %vm37_vm0 = vcmask 588800   ;;  %s1113_s1 = inlined_call_operand.vmem [shape: f32[3,72,128], index: 1, kind: input, shape index: {}]   ;;  %s1114_s0 = inlined_call_operand.vmem [shape: f32[36,72], index: 0, kind: input, shape index: {}]   ;;  %s1115_s2 = inlined_call_operand.vmem [shape: f32[1,128], index: 2, kind: input, shape index: {}]   ;;  %s1116_s3 = inlined_call_operand.vmem [shape: f32[32,128], index: 3, kind: output, shape index: {}]  }
   0x1   :  { %v603_v0 = vld [vmem:[%s1113_s1 + $0x48] sm:$0xff]  ;;  %v604_v1 = vld [vmem:[%s1113_s1 + $0x50] sm:$0xff]  ;;  %v605_v2 = vld [vmem:[%s1113_s1 + $0x58] sm:$0xff] }
   0x2   :  { %v845_v3 = vpack.c.bf16 %v604_v1, %v603_v0  ;;  %v606_v4 = vld [vmem:[%s1113_s1 + $0x60] sm:$0xff]  ;;  %v607_v6 = vld [vmem:[%s1113_s1 + $0x68] sm:$0xff]  ;;  %v608_v7 = vld [vmem:[%s1113_s1 + $0x70] sm:$0xff] }
   0x3   :  { %v849_v5 = vpack.c.bf16 %v606_v4, %v605_v2  ;;  %v25_v8 = vld [vmem:[%s1114_s0 + $0x1] sm:$0xff]  ;;  %v319_v9 = vld [vmem:[%s1114_s0 + $0x13] sm:$0xff]  ;;  %v853_v10 = vpack.c.bf16 %v608_v7, %v607_v6  ;;  %v26_v20 = vld [vmem:[%s1114_s0 + $0x9] sm:$0xff] }
   0x4   :  { %846 = vmatprep.subr.bf16.mxu0 %v845_v3  ;;  %894 = vmatprep.subr.bf16.mxu1 %v845_v3  ;;  %v609_v11 = vld [vmem:[%s1113_s1 + $0x78] sm:$0xff]  ;;  %v610_v12 = vld [vmem:[%s1113_s1 + $0x80] sm:$0xff]  ;;  %v611_v14 = vld [vmem:[%s1113_s1 + $0x88] sm:$0xff] }
   0x5   :  { %848 = vmatpush3.bf16.msra.mxu0 %v845_v3  ;;  %896 = vmatpush3.bf16.msra.mxu1 %v845_v3  ;;  %v857_v13 = vpack.c.bf16 %v610_v12, %v609_v11  ;;  %v16_v15 = vld [vmem:[%s1113_s1] sm:$0xff]  ;;  %v17_v16 = vld [vmem:[%s1113_s1 + $0x8] sm:$0xff]  ;;  %v18_v18 = vld [vmem:[%s1113_s1 + $0x10] sm:$0xff] }
   0x6   :  { %850 = vmatprep.subr.bf16.mxu0 %v849_v5  ;;  %898 = vmatprep.subr.bf16.mxu1 %v849_v5  ;;  %v861_v17 = vpack.c.bf16 %v17_v16, %v16_v15  ;;  %v19_v19 = vld [vmem:[%s1113_s1 + $0x18] sm:$0xff]  ;;  %v20_v23 = vld [vmem:[%s1113_s1 + $0x20] sm:$0xff]  ;;  %v21_v24 = vld [vmem:[%s1113_s1 + $0x28] sm:$0xff] }
   0x7   :  { %737 = vmatprep.mubr.msk.f32.mxu0 %vm37_vm0, %v25_v8  ;;  %800 = vmatprep.mubr.msk.f32.mxu1 %vm37_vm0, %v319_v9  ;;  %v320_v21 = vld [vmem:[%s1114_s0 + $0x1b] sm:$0xff]  ;;  %v865_v22 = vpack.c.bf16 %v19_v19, %v18_v18  ;;  %v308_v26 = vld [vmem:[%s1114_s0 + $0x12] sm:$0xff]  ;;  %v869_v27 = vpack.c.bf16 %v21_v24, %v20_v23  ;;  %v619_v36 = vld [vmem:[%s1113_s1 + $0xa8] sm:$0xff] }
   0x8   :  { %v14_v25 = vld [vmem:[%s1114_s0] sm:$0xff]  ;;  %v22_v28 = vld [vmem:[%s1113_s1 + $0x30] sm:$0xff]  ;;  %v23_v29 = vld [vmem:[%s1113_s1 + $0x38] sm:$0xff] }
   0x9   :  { %852 = vmatpush3.bf16.msra.mxu0 %v849_v5  ;;  %900 = vmatpush3.bf16.msra.mxu1 %v849_v5  ;;  %v873_v30 = vpack.c.bf16 %v23_v29, %v22_v28  ;;  %v24_v31 = vld [vmem:[%s1113_s1 + $0x40] sm:$0xff]  ;;  %v616_v32 = vld [vmem:[%s1113_s1 + $0x90] sm:$0xff]  ;;  %v617_v33 = vld [vmem:[%s1113_s1 + $0x98] sm:$0xff] }
   0xa   :  { %854 = vmatprep.subr.bf16.mxu0 %v853_v10  ;;  %902 = vmatprep.subr.bf16.mxu1 %v853_v10  ;;  %v877_v34 = vpack.c.bf16 %v617_v33, %v616_v32  ;;  %v618_v35 = vld [vmem:[%s1113_s1 + $0xa0] sm:$0xff]  ;;  %v15_v37 = vld [vmem:[%s1114_s0 + $0x8] sm:$0xff]  ;;  %v620_v40 = vld [vmem:[%s1113_s1 + $0xb0] sm:$0xff] }
   0xb   :  { %v309_v38 = vld [vmem:[%s1114_s0 + $0x1a] sm:$0xff]  ;;  %v881_v39 = vpack.c.bf16 %v619_v36, %v618_v35  ;;  %v200_v42 = vld [vmem:[%s1114_s0 + $0x2] sm:$0xff]  ;;  %v624_v48 = vld [vmem:[%s1113_s1 + $0xd0] sm:$0xff] }
   0xc   :  { %v621_v41 = vld [vmem:[%s1113_s1 + $0xb8] sm:$0xff]  ;;  %v622_v45 = vld [vmem:[%s1113_s1 + $0xc0] sm:$0xff]  ;;  %v623_v46 = vld [vmem:[%s1113_s1 + $0xc8] sm:$0xff] }
   0xd   :  { %856 = vmatpush3.bf16.msra.mxu0 %v853_v10  ;;  %904 = vmatpush3.bf16.msra.mxu1 %v853_v10  ;;  %v492_v43 = vld [vmem:[%s1114_s0 + $0x14] sm:$0xff]  ;;  %v885_v44 = vpack.c.bf16 %v621_v41, %v620_v40  ;;  %v889_v47 = vpack.c.bf16 %v623_v46, %v622_v45  ;;  %v201_v49 = vld [vmem:[%s1114_s0 + $0xa] sm:$0xff]  ;;  %v493_v50 = vld [vmem:[%s1114_s0 + $0x1c] sm:$0xff] }
   0xe   :  { %858 = vmatprep.subr.bf16.mxu0 %v857_v13  ;;  %906 = vmatprep.subr.bf16.mxu1 %v857_v13  ;;  %v627_v51 = vld [vmem:[%s1115_s2] ss:$0 sm:$0xff] }
  0x11   :  { %860 = vmatpush3.bf16.msra.mxu0 %v857_v13  ;;  %908 = vmatpush3.bf16.msra.mxu1 %v857_v13 }
  0x12   :  { %735 = vmatprep.subr.mxu0 %v611_v14  ;;  %798 = vmatprep.subr.mxu1 %v611_v14 }
  0x15   :  { %736 = vmatpush3.msra.mxu0 %v611_v14  ;;  %799 = vmatpush3.msra.mxu1 %v611_v14 }
  0x16   :  { %862 = vmatprep.subr.bf16.mxu0 %v861_v17  ;;  %910 = vmatprep.subr.bf16.mxu1 %v861_v17 }
  0x17   :  { %738 = vmatmul.mubr.msk.f32.vlgmr.msra.gmra.mrb[0].mxu0 %vm37_vm0, %v26_v20  ;;  %801 = vmatmul.mubr.msk.f32.vlgmr.msra.gmra.mrb[0].mxu1 %vm37_vm0, %v320_v21 }
  0x18   :  { %864 = vmatpush3.bf16.msra.mxu0 %v861_v17  ;;  %912 = vmatpush3.bf16.msra.mxu1 %v861_v17 }
  0x19   :  { %866 = vmatprep.subr.bf16.mxu0 %v865_v22  ;;  %914 = vmatprep.subr.bf16.mxu1 %v865_v22 }
  0x1a   :  { %758 = vmatprep.mubr.msk.f32.mxu0 %vm37_vm0, %v14_v25  ;;  %821 = vmatprep.mubr.msk.f32.mxu1 %vm37_vm0, %v308_v26 }
  0x1c   :  { %868 = vmatpush3.bf16.msra.mxu0 %v865_v22  ;;  %916 = vmatpush3.bf16.msra.mxu1 %v865_v22 }
  0x1d   :  { %870 = vmatprep.subr.bf16.mxu0 %v869_v27  ;;  %918 = vmatprep.subr.bf16.mxu1 %v869_v27 }
  0x20   :  { %872 = vmatpush3.bf16.msra.mxu0 %v869_v27  ;;  %920 = vmatpush3.bf16.msra.mxu1 %v869_v27 }
  0x21   :  { %874 = vmatprep.subr.bf16.mxu0 %v873_v30  ;;  %922 = vmatprep.subr.bf16.mxu1 %v873_v30 }
  0x24   :  { %876 = vmatpush3.bf16.msra.mxu0 %v873_v30  ;;  %924 = vmatpush3.bf16.msra.mxu1 %v873_v30 }
  0x25   :  { %756 = vmatprep.subr.mxu0 %v24_v31  ;;  %819 = vmatprep.subr.mxu1 %v24_v31 }
  0x28   :  { %757 = vmatpush3.msra.mxu0 %v24_v31  ;;  %820 = vmatpush3.msra.mxu1 %v24_v31 }
  0x29   :  { %878 = vmatprep.subr.bf16.mxu0 %v877_v34  ;;  %926 = vmatprep.subr.bf16.mxu1 %v877_v34 }
  0x2a   :  { %759 = vmatmul.mubr.msk.f32.vlgmr.msra.gmra.mrb[0].mxu0 %vm37_vm0, %v15_v37  ;;  %822 = vmatmul.mubr.msk.f32.vlgmr.msra.gmra.mrb[0].mxu1 %vm37_vm0, %v309_v38 }
  0x2b   :  { %880 = vmatpush3.bf16.msra.mxu0 %v877_v34  ;;  %928 = vmatpush3.bf16.msra.mxu1 %v877_v34 }
  0x2c   :  { %882 = vmatprep.subr.bf16.mxu0 %v881_v39  ;;  %930 = vmatprep.subr.bf16.mxu1 %v881_v39 }
  0x2d   :  { %779 = vmatprep.mubr.msk.f32.mxu0 %vm37_vm0, %v200_v42  ;;  %842 = vmatprep.mubr.msk.f32.mxu1 %vm37_vm0, %v492_v43 }
  0x2f   :  { %884 = vmatpush3.bf16.msra.mxu0 %v881_v39  ;;  %932 = vmatpush3.bf16.msra.mxu1 %v881_v39 }
  0x30   :  { %886 = vmatprep.subr.bf16.mxu0 %v885_v44  ;;  %934 = vmatprep.subr.bf16.mxu1 %v885_v44 }
  0x33   :  { %888 = vmatpush3.bf16.msra.mxu0 %v885_v44  ;;  %936 = vmatpush3.bf16.msra.mxu1 %v885_v44 }
  0x34   :  { %890 = vmatprep.subr.bf16.mxu0 %v889_v47  ;;  %938 = vmatprep.subr.bf16.mxu1 %v889_v47 }
  0x37   :  { %892 = vmatpush3.bf16.msra.mxu0 %v889_v47  ;;  %940 = vmatpush3.bf16.msra.mxu1 %v889_v47 }
  0x38   :  { %777 = vmatprep.subr.mxu0 %v624_v48  ;;  %840 = vmatprep.subr.mxu1 %v624_v48 }
  0x3b   :  { %778 = vmatpush3.msra.mxu0 %v624_v48  ;;  %841 = vmatpush3.msra.mxu1 %v624_v48 }
  0x3c   :  { %780 = vmatmul.mubr.msk.f32.vlgmr.msra.gmra.mrb[0].mxu0 %vm37_vm0, %v201_v49  ;;  %843 = vmatmul.mubr.msk.f32.vlgmr.msra.gmra.mrb[0].mxu1 %vm37_vm0, %v493_v50 }
 0x10f   :  { %v781_v52 = vpop.f32.mrb[0].mxu0  ;;  %v844_v53 = vpop.f32.mrb[0].mxu1 }
 0x110   :  { %v303_v54 = vadd.f32 %v781_v52, %v627_v51  ;;  %v594_v55 = vadd.f32 %v844_v53, %v627_v51  ;;  %v284_v56 = vpop.f32.mrb[1].mxu0  ;;  %v575_v57 = vpop.f32.mrb[1].mxu1 }
 0x111   :  { %v302_v58 = vadd.f32 %v627_v51, %v284_v56  ;;  %v593_v59 = vadd.f32 %v627_v51, %v575_v57 }
 0x112   :  { %v305_v60 = vmax.f32 %v303_v54, 0.0  ;;  %v596_v61 = vmax.f32 %v594_v55, 0.0 }
 0x113   :  { %v304_v62 = vmax.f32 %v302_v58, 0.0  ;;  %v595_v63 = vmax.f32 %v593_v59, 0.0 }
 0x114   :  { %307 = vst [vmem:[%s1116_s3 + $0x8] sm:$0xff] %v305_v60  ;;  %598 = vst [vmem:[%s1116_s3 + $0x18] sm:$0xff] %v596_v61 }
 0x115   :  { %306 = vst [vmem:[%s1116_s3] sm:$0xff] %v304_v62  ;;  %597 = vst [vmem:[%s1116_s3 + $0x10] sm:$0xff] %v595_v63 }

</bundles_post_ra>
